<compile_context>
chip_gen: v7x
topology: tpu7x:2x2x1
jax: 0.10.0
libtpu: 0.0.40
codegen_flags: <defaults>
</compile_context>

<pallas_src>
import jax
import jax.numpy as jnp
from jax.experimental import pallas as pl
from jax.experimental.pallas import tpu as pltpu

LANES = 128  # vreg lane width; last dim of the slab / blocks.


def _round_up(x, m):
    return ((x + m - 1) // m) * m


def _affine_kernel(w_ref, b_ref, x_ref, o_ref):
    # w_ref / b_ref: (1,) float32 scalars in SMEM (32-bit regardless of x dtype).
    # x_ref / o_ref: (tm, 128) lane-dense tiles in VMEM (full-width vst stores).
    w = w_ref[0]
    b = b_ref[0]
    # TODO(synk): on v6e/v7x a bf16 input could skip the f32 upcast; kept f32
    # for v5e (no bf16 VPU) and because the kernel is HBM-bound anyway.
    o_ref[...] = (x_ref[...].astype(jnp.float32) * w + b).astype(o_ref.dtype)


def _affine_pallas(x2d, w32, b32, *, tm, donate_x=False):
    """Run y = x*w + b on a lane-dense (rows, 128) slab."""
    rows = x2d.shape[0]
    itemsize = jnp.dtype(x2d.dtype).itemsize

    if rows <= 8:
        tm_eff = rows  # single full-extent block (dims equal array -> allowed)
    else:
        # Keep >= ~4 grid steps (v7x TC sharding + DMA/compute overlap) but
        # never exceed the requested tm (VMEM budget); multiple of 8 sublanes.
        tm_eff = max(8, min(_round_up(tm, 8), _round_up(pl.cdiv(rows, 4), 8)))

    grid = (pl.cdiv(rows, tm_eff),)  # ragged last block handled by Pallas

    block_bytes = tm_eff * LANES * itemsize
    # Peak ~ 2 buffers x (in + out) x block; add headroom, stay well under the
    # v7x 32 MiB scoped / 64 MiB physical VMEM (and v5e's 16 MiB default).
    vmem_limit = int(min(32 << 20, max(8 << 20, 6 * block_bytes)))

    n_elems = rows * LANES
    cost = pl.CostEstimate(
        flops=2 * n_elems,
        transcendentals=0,
        bytes_accessed=2 * n_elems * itemsize,  # read x + write y
    )

    return pl.pallas_call(
        _affine_kernel,
        out_shape=jax.ShapeDtypeStruct((rows, LANES), x2d.dtype),
        grid=grid,
        in_specs=[
            pl.BlockSpec(memory_space=pltpu.SMEM),            # weight (1,) f32
            pl.BlockSpec(memory_space=pltpu.SMEM),            # bias   (1,) f32
            pl.BlockSpec((tm_eff, LANES), lambda i: (i, 0)),   # x tile
        ],
        out_specs=pl.BlockSpec((tm_eff, LANES), lambda i: (i, 0)),
        compiler_params=pltpu.CompilerParams(
            dimension_semantics=("parallel",),   # v7x: shard grid across 2 TCs
            vmem_limit_bytes=vmem_limit,
        ),
        cost_estimate=cost,
        # Only alias when the caller genuinely donates x (x2d may be a
        # zero-copy view of the caller's buffer; aliasing would clobber it).
        input_output_aliases={2: 0} if donate_x else {},
    )(w32, b32, x2d)


def linear_forward(x, weight, bias, *, tm=2048, min_pallas_elems=1 << 17,
                   donate_x=False):
    """Equivalent of torch.nn.Linear(1, 1): x (N, 1) -> y (N, 1)."""
    N, in_f = x.shape
    assert in_f == 1

    w32 = jnp.asarray(weight, dtype=jnp.float32).reshape(1)  # torch (out_f, in_f)
    b32 = jnp.asarray(bias, dtype=jnp.float32).reshape(1)    # torch (out_f,)

    def plain(v):
        return (v.astype(jnp.float32) * w32[0] + b32[0]).astype(x.dtype)

    # Small batches: fused XLA elementwise is already at roofline; Pallas
    # dispatch + wrapper would only add overhead.
    if N < min_pallas_elems:
        return plain(x)

    x_flat = x.reshape(-1)            # (N,1) -> (N,): same layout, no copy
    n_main = (N // LANES) * LANES     # lane-aligned prefix handled by Pallas
    if n_main == 0:
        return plain(x)
    rows = n_main // LANES

    # Zero-copy reshape when N is a multiple of 128; otherwise a prefix slice
    # (cheaper than jnp.pad, which would re-read/write every byte of x).
    x_main = x_flat[:n_main].reshape(rows, LANES)
    y_main = _affine_pallas(
        x_main, w32, b32, tm=tm,
        donate_x=donate_x and n_main == N,
    ).reshape(-1)

    if n_main == N:
        return y_main.reshape(N, 1)

    # <=127-element tail: tiny plain-JAX epilogue.
    y_tail = plain(x_flat[n_main:])
    return jnp.concatenate([y_main, y_tail]).reshape(N, 1)


if __name__ == "__main__":
    key = jax.random.PRNGKey(0)
    kx, kw, kb = jax.random.split(key, 3)

    # Deterministic parameters matching nn.Linear(1, 1) shapes.
    weight = jax.random.normal(kw, (1, 1), dtype=jnp.float32)   # (out_f, in_f)
    bias = jax.random.normal(kb, (1,), dtype=jnp.float32)       # (out_f,)

    def ref(v):
        return v @ weight.T + bias

    # 1) Tiny batch (original demo size): plain-JAX fast path.
    x_small = jax.random.normal(kx, (8, 1), dtype=jnp.float32)
    y_small = jax.block_until_ready(linear_forward(x_small, weight, bias))
    assert y_small.shape == (8, 1)
    assert jnp.allclose(y_small, ref(x_small), atol=1e-6, rtol=1e-6)

    # 2) Pallas path, N an exact multiple of 128: zero-copy reshape, no pad,
    #    multi-step grid (rows=64 -> tm=16 -> 4 grid steps).
    N1 = 8192
    x1 = jax.random.normal(kx, (N1, 1), dtype=jnp.float32)
    y1 = jax.block_until_ready(
        linear_forward(x1, weight, bias, min_pallas_elems=0))
    assert y1.shape == (N1, 1)
    assert jnp.allclose(y1, ref(x1), atol=1e-6, rtol=1e-6)

    # 3) Pallas path, non-multiple-of-128 N with a ragged last grid block:
    #    rows=13, tm=8 -> grid of 2 (last block partial) + 5-element tail.
    N2 = 1669
    x2 = jax.random.normal(kx, (N2, 1), dtype=jnp.float32)
    y2 = jax.block_until_ready(
        linear_forward(x2, weight, bias, min_pallas_elems=0))
    assert y2.shape == (N2, 1)
    assert jnp.allclose(y2, ref(x2), atol=1e-6, rtol=1e-6)

    print("KERNEL_OK")
</pallas_src>

<mosaic_0001>
module attributes {stable_mosaic.version = 11 : i64} {
  func.func @_affine_kernel(%arg0: i32, %arg1: memref<1xf32, #tpu.memory_space<smem>>, %arg2: memref<1xf32, #tpu.memory_space<smem>>, %arg3: memref<16x128xf32, #tpu.memory_space<vmem>>, %arg4: memref<16x128xf32, #tpu.memory_space<vmem>>) attributes {dimension_semantics = [#tpu.dimension_semantics<parallel>], iteration_bounds = array<i64: 4>, scalar_prefetch = 0 : i64, scratch_operands = 0 : i64, tpu.core_type = #tpu.core_type<tc>, window_params = [{transform_indices = @transform_0, window_bounds = array<i64: 1>}, {transform_indices = @transform_1, window_bounds = array<i64: 1>}, {transform_indices = @transform_2, window_bounds = array<i64: 16, 128>}, {transform_indices = @transform_3, window_bounds = array<i64: 16, 128>}]} {
    %c0 = arith.constant 0 : index
    %0 = memref.load %arg1[%c0] : memref<1xf32, #tpu.memory_space<smem>>
    %c0_0 = arith.constant 0 : index
    %1 = memref.load %arg2[%c0_0] : memref<1xf32, #tpu.memory_space<smem>>
    %c0_1 = arith.constant 0 : index
    %c0_2 = arith.constant 0 : index
    %2 = vector.load %arg3[%c0_1, %c0_2] : memref<16x128xf32, #tpu.memory_space<vmem>>, vector<16x128xf32>
    %3 = vector.broadcast %0 : f32 to vector<16x128xf32>
    %4 = arith.mulf %2, %3 : vector<16x128xf32>
    %5 = vector.broadcast %1 : f32 to vector<16x128xf32>
    %6 = arith.addf %4, %5 : vector<16x128xf32>
    %c0_3 = arith.constant 0 : index
    %c0_4 = arith.constant 0 : index
    %7 = vector.load %arg4[%c0_3, %c0_4] : memref<16x128xf32, #tpu.memory_space<vmem>>, vector<16x128xf32>
    tpu.vector_store %arg4[%c0_3, %c0_4], %6 {strides = array<i32>} : memref<16x128xf32, #tpu.memory_space<vmem>>, vector<16x128xf32>,
    return
  }
  func.func @transform_0(%arg0: i32) -> i32 {
    %c0_i32 = arith.constant 0 : i32
    %c0_i32_0 = arith.constant 0 : i32
    return %c0_i32 : i32
  }
  func.func @transform_1(%arg0: i32) -> i32 {
    %c0_i32 = arith.constant 0 : i32
    %c0_i32_0 = arith.constant 0 : i32
    return %c0_i32 : i32
  }
  func.func @transform_2(%arg0: i32) -> (i32, i32) {
    %c0_i32 = arith.constant 0 : i32
    %c0_i32_0 = arith.constant 0 : i32
    return %arg0, %c0_i32 : i32, i32
  }
  func.func @transform_3(%arg0: i32) -> (i32, i32) {
    %c0_i32 = arith.constant 0 : i32
    %c0_i32_0 = arith.constant 0 : i32
    return %arg0, %c0_i32 : i32, i32
  }
}

</mosaic_0001>

<bundles_post_ra>
// kernel: tpu_custom_call.1
= control target key start
LH: loop header
LB: loop body
LE: loop exit
PB: predicated region body
PF: predicated region fallthrough
CT: control target
= control target key end

     0   :  { %s648_s0 = inlined_call_operand.<no memory space> [shape: f32[1], index: 0, kind: input, shape index: {}]   ;;  %s649_s1 = inlined_call_operand.<no memory space> [shape: f32[1], index: 1, kind: input, shape index: {}]   ;;  %s650_s2 = inlined_call_operand.hbm [shape: f32[64,128], index: 2, kind: input, shape index: {}]   ;;  %s651_s3 = inlined_call_operand.hbm [shape: f32[64,128], index: 3, kind: output, shape index: {}]  }
   0x1   :  { %8 = sst [smem:[#allocation2]] %s648_s0 }
   0x2   :  { %9 = sst [smem:[#allocation3]] %s649_s1 }
   0x3   :  { %10 = vsyncpa [#allocation5], 0 }
   0x4   :  { %12 = vsyncpa [#allocation5 + $0x1], 0 }
   0x5   :  { %13 = vsyncpa [#allocation6], 0 }
   0x6   :  { %15 = vsyncpa [#allocation6 + $0x1], 0  ;;  %s488_s16 = smov 0   ;;  %s490_s17 = smov 0  }
   0x7   :  { %s492_s18 = smov 0   ;;  %s494_s19 = smov 0  }
   0x8 LB: > { %s509_s0 = sadd.s32 4294967295, %s454_s19   ;;  %s292_s1 = sadd.s32 4294967294, %s454_s19   ;;  %s454_s19 = sphi %s494_s19, %s663_s19   ;;  %s450_s18 = sphi %s492_s18, %s662_s18   ;;  %s446_s17 = sphi %s490_s17, %s661_s17   ;;  %s442_s16 = sphi %s488_s16, %s660_s16  }
   0x9   : > { %s513_s20 = sadd.s32 1, %s454_s19   ;;  %s70_s21 = sadd.s32 1, %s450_s18 }
   0xa   : > { %s67_s22 = ssub.s32 %s454_s19, %s513_s20  ;;  %p77_p0 = scmp.ne.s32.totalorder %s450_s18, %s446_s17 }
   0xb   : > { %p68_p1 = scmp.eq.s32.totalorder %s67_s22, 0  ;;  %p78_p2 = scmp.eq.s32.totalorder %s454_s19, 0 }
   0xc   : > { %p83_p3 = scmp.ne.s32.totalorder %s446_s17, %s442_s16  ;;  %p84_p4 = scmp.eq.s32.totalorder %s509_s0, 0 }
   0xd   : > { %s525_s23 = scalar_select %p68_p1, %s450_s18, %s70_s21  }
   0xe   : > { %p527_p5 = por %p78_p2, %p77_p0  ;;  %p531_p6 = por %p84_p4, %p83_p3 }
   0xf   : > { %p107_p7 = scmp.eq.s32.totalorder %s509_s0, 3  ;;  %p113_p8 = scmp.eq.s32.totalorder %s292_s1, 3 }
  0x10   : > { %p320_p9 = scmp.lt.s32.totalorder %s454_s19, 4  ;;  %s139_s28 = sand.u32 1, %s450_s18  }
  0x11   : > { %p537_p10 = por %p107_p7, %p77_p0  ;;  %p541_p11 = por %p113_p8, %p83_p3 }
  0x12   : > { %s306_s29 = sshll.u32 %s454_s19, 8  ;;  %s295_s30 = sshll.u32 %s139_s28, 4 }
  0x13   : > { %s655_s26 = scalar_select %p537_p10, 1, 0 }
  0x14   : > { %s656_s27 = scalar_select %p541_p11, 1, 0 }
  0x15   : > { %s550_s6 = scalar_lea.hbm %s650_s2, %s306_s29  ;;  %s143_s7 = scalar_lea.vmem [#allocation4], %s295_s30 }
  0x16   : > { %s150_s8 = sshll.u32 %s143_s7, 4  ;;  %p554_p12 = pnand %p320_p9, %p527_p5  ;;  %s558_s8 = int_to_ptr.vmem [resolvable:$true] %s150_s8 }
  0x17   : > { %s560_s10 = scalar_lea.sflag [#allocation5], %s139_s28  ;;  %s358_s11 = scalar_lea.hbm %s550_s6, 256 }
  0x18   : > { %p359_p13 = scmp.ne.s32.totalorder %s550_s6, %s358_s11  ;;  %p360_p0 = pneg %p554_p12 }
  0x19   : > { %s363_s14 = scalar_lea.hbm %s650_s2, 1024  ;;  %p364_p3 = scmp.lt.u32.totalorder %s550_s6, %s650_s2 }
  0x1a   : > { %p361_p1 = pnand %p360_p0, %p359_p13  ;;  %p365_p4 = scmp.lt.u32.totalorder %s363_s14, %s358_s11 }
  0x1b   : > { %p367_p7 = scmp.lt.u32.totalorder %s358_s11, %s550_s6 }
  0x1c   : > { %p362_p2 = pneg %p361_p1  ;;  %p366_p5 = por %p365_p4, %p364_p3 }
  0x1e   : > { %p368_p8 = por %p367_p7, %p366_p5 }
  0x20   : > { %p369_p9 = pnand %p368_p8, %p362_p2 }
  0x22   : > { %372 = shalt.err (!%p369_p9)
}
  0x23   : > { %s373_s21 = scalar_lea.vmem %s558_s8, 256  ;;  %s456_s22 = smov [#allocation4]  }
  0x24   : > { %p374_p13 = scmp.ne.s32.totalorder %s558_s8, %s373_s21  ;;  %s378_s24 = sshll.u32 %s456_s22, 4  ;;  %s379_s24 = int_to_ptr.vmem [resolvable:$false] %s378_s24 }
  0x25   : > { %s380_s28 = scalar_lea.vmem %s379_s24, 512  ;;  %p381_p10 = scmp.lt.s32.totalorder %s558_s8, %s379_s24 }
  0x26   : > { %p376_p1 = pnand %p374_p13, %p360_p0  ;;  %p382_p3 = scmp.lt.s32.totalorder %s380_s28, %s373_s21 }
  0x28   : > { %p377_p11 = pneg %p376_p1  ;;  %p383_p4 = por %p382_p3, %p381_p10 }
  0x2a   : > { %p384_p5 = pnand %p383_p4, %p377_p11 }
  0x2c   : > { %387 = shalt.err (!%p384_p5)
}
  0x2d   : > { %s457_s29 = smov 128   ;;  %s458_s30 = smov 8  }
  0x2e   : > { %315 = dma.hbm_to_vmem [thread:$0]  (!%p554_p12), %s550_s6, 256, %s558_s8, %s560_s10, %s457_s29, %s457_s29, %s458_s30  }
  0x2f   : > { %p298_p0 = scmp.ge.s32.totalorder %s454_s19, 1  ;;  %p158_p2 = scmp.lt.s32.totalorder %s454_s19, 5 }
  0x31   : > { %p159_p7 = pnand %p298_p0, %p158_p2 }
  0x32   : > { %s591_s4 = sand.u32 (!%p159_p7), 1, %s446_s17  }
  0x33   : > { %162 = sbr.rel (%p159_p7) target bundleno = 87 (0x57), region = 32  ;;  %s299_s5 = sshll.u32 (!%p159_p7), %s591_s4, 4 }
  0x34   : > { %s165_s7 = scalar_lea.sflag (!%p159_p7), [#allocation5], %s591_s4  ;;  %s168_s11 = scalar_lea.vmem (!%p159_p7), [#allocation4], %s299_s5 }
  0x3a   : > { %433 = dma.done.wait (%p531_p6), %s165_s7, 256  }
  0x3b   : > { %435 = vsyncadd (%p531_p6), %s165_s7, 4294967040  ;;  %s193_s6 = sld [smem:[#allocation2]]  ;;  %s190_s9 = scalar_lea.vmem [#allocation7], %s299_s5  ;;  %v195_v0 = vld [vmem:[%s168_s11] sm:$0xff]  ;;  %v196_v3 = vld [vmem:[%s168_s11 + $0x8] sm:$0xff] }
  0x3c   : > { %s194_s8 = sld [smem:[#allocation3]]  ;;  %s219_s10 = sshll.u32 %s190_s9, 4  ;;  %s600_s10 = int_to_ptr.vmem [resolvable:$true] %s219_s10 }
  0x3d   : > { %s307_s12 = sshll.u32 %s509_s0, 8  ;;  %s206_s0 = scalar_lea.sflag [#allocation6], %s591_s4 }
  0x3e   : > { %s605_s25 = scalar_lea.hbm %s651_s3, %s307_s12  ;;  %s388_s15 = scalar_lea.vmem %s600_s10, 256 }
  0x3f   : > { %p389_p6 = scmp.ne.s32.totalorder %s600_s10, %s388_s15  ;;  %p658_p10 = scmp.ne.s32.totalorder %s655_s26, 0 }
  0x40   : > { %s459_s1 = smov [#allocation7]  }
  0x41   : > { %v197_v1 = vstv %s193_s6  ;;  %p390_p11 = pnand %p389_p6, %p658_p10  ;;  %s392_s21 = sshll.u32 %s459_s1, 4  ;;  %s393_s21 = int_to_ptr.vmem [resolvable:$false] %s392_s21 }
  0x42   : > { %v200_v2 = vstv %s194_s8  ;;  %v198_v4 = vmul.f32 %v197_v1, %v195_v0  ;;  %v199_v5 = vmul.f32 %v197_v1, %v196_v3  ;;  %s394_s22 = scalar_lea.vmem %s393_s21, 512  ;;  %p395_p8 = scmp.lt.s32.totalorder %s600_s10, %s393_s21 }
  0x43   : > { %p391_p12 = pneg %p390_p11  ;;  %p396_p9 = scmp.lt.s32.totalorder %s394_s22, %s388_s15 }
  0x44   : > { %v201_v6 = vadd.f32 %v200_v2, %v198_v4  ;;  %v202_v7 = vadd.f32 %v200_v2, %v199_v5 }
  0x45   : > { %p397_p13 = por %p396_p9, %p395_p8 }
  0x46   : > { %203 = vst [vmem:[%s190_s9] sm:$0xff] %v201_v6  ;;  %204 = vst [vmem:[%s190_s9 + $0x8] sm:$0xff] %v202_v7 }
  0x47   : > { %p398_p1 = pnand %p397_p13, %p391_p12 }
  0x49   : > { %401 = shalt.err (!%p398_p1)
}
  0x4a   : > { %s402_s24 = scalar_lea.hbm %s605_s25, 256  ;;  %s406_s30 = scalar_lea.hbm %s651_s3, 1024 }
  0x4b   : > { %p403_p3 = scmp.ne.s32.totalorder %s605_s25, %s402_s24  ;;  %p407_p0 = scmp.lt.u32.totalorder %s605_s25, %s651_s3 }
  0x4c   : > { %p408_p2 = scmp.lt.u32.totalorder %s406_s30, %s402_s24  ;;  %p410_p6 = scmp.lt.u32.totalorder %s402_s24, %s605_s25 }
  0x4d   : > { %p404_p4 = pnand %p403_p3, %p658_p10 }
  0x4e   : > { %p409_p7 = por %p408_p2, %p407_p0 }
  0x4f   : > { %p405_p5 = pneg %p404_p4 }
  0x50   : > { %p411_p11 = por %p410_p6, %p409_p7 }
  0x52   : > { %p412_p12 = pnand %p411_p11, %p405_p5 }
  0x54   : > { %415 = shalt.err (!%p412_p12)
}
  0x55   : > { %s460_s11 = smov 128   ;;  %s461_s6 = smov 8  }
  0x56   : > { %310 = dma.vmem_to_hbm [thread:$0]  (%p658_p10), %s600_s10, 256, %s605_s25, %s206_s0, %s460_s11, %s460_s11, %s461_s6  }
  0x57 PF: > { %p321_p8 = scmp.ge.s32.totalorder %s454_s19, 2  ;;  %s234_s8 = sand.u32 1, %s442_s16  }
  0x58   : > { %p659_p9 = scmp.ne.s32.totalorder %s656_s27, 0  ;;  %s235_s9 = scalar_lea.sflag [#allocation6], %s234_s8 }
  0x5a   : > { %p317_p13 = pnand %p321_p8, %p659_p9 }
  0x5c   : > { %437 = dma.done.wait (!%p317_p13), %s235_s9, 256  }
  0x5d   : > { %439 = vsyncadd (!%p317_p13), %s235_s9, 4294967040  ;;  %p18_p1 = scmp.ge.s32.totalorder %s513_s20, 6   ;;  %s660_s16 = smov %s446_s17 }
  0x5e   : > { %s661_s17 = smov %s450_s18  ;;  %s662_s18 = smov %s525_s23 }
  0x5f   : > { %s663_s19 = smov %s513_s20  ;;  %20 = sbr.rel (!%p18_p1) target bundleno = 8 (0x8), region = 77 }
  0x66   :  { %240 = vsyncpa [#allocation5], 1 }
  0x67   :  { %242 = vsyncpa [#allocation5 + $0x1], 1 }
  0x68   :  { %243 = vsyncpa [#allocation6], 1 }
  0x69   :  { %245 = vsyncpa [#allocation6 + $0x1], 1 }

</bundles_post_ra>
